<compile_context>
chip_gen: v7x
topology: tpu7x:2x2x1
jax: 0.10.0
libtpu: 0.0.40
codegen_flags: <defaults>
</compile_context>

<pallas_src>
import functools

import jax
import jax.numpy as jnp
from jax.experimental import pallas as pl
from jax.experimental.pallas import tpu as pltpu

HIDDEN = 128
INPUT_DIM = 1


def _leaky_relu(x, slope=0.2):
    return jnp.where(x > 0, x, slope * x)


def discriminator_kernel(x_ref, w23_ref, p_ref, o_ref):
    # x_ref:   (1, TB)        input samples for this batch tile (transposed)
    # w23_ref: (2, 128, 128)  stacked hidden weights [w2, w3], PyTorch (out,in)
    # p_ref:   (128, 6)       packed small params:
    #                         [:,0]=w1, [:,1]=b1, [:,2]=b2, [:,3]=b3,
    #                         [:,4]=w4^T, [:,5]=b4 (broadcast column)
    # o_ref:   (1, TB)        sigmoid outputs (lane-dense row)
    x = x_ref[...]                          # (1, TB)

    w1 = p_ref[:, 0:1]                      # (128, 1)
    b1 = p_ref[:, 1:2]
    b2 = p_ref[:, 2:3]
    b3 = p_ref[:, 3:4]
    w4t = p_ref[:, 4:5]                     # (128, 1)
    b4 = p_ref[0:1, 5:6]                    # (1, 1)

    # Layer 1: rank-1 (K=1) outer product -> pure VPU broadcast, no MXU pass.
    h = _leaky_relu(w1 * x + b1)            # (128, TB)

    # Layers 2 & 3: 128x128 @ 128xTB on the MXU, batch tile on the lane axis.
    h = _leaky_relu(
        jnp.dot(w23_ref[0], h, preferred_element_type=jnp.float32) + b2)
    h = _leaky_relu(
        jnp.dot(w23_ref[1], h, preferred_element_type=jnp.float32) + b3)

    # Layer 4: (1,128)@(128,TB) done as a sublane reduction (VPU mul + XLU).
    logits = jnp.sum(w4t * h, axis=0, keepdims=True) + b4      # (1, TB)

    # Sigmoid: exp and approximate reciprocal both issue on the EUP slot.
    o_ref[...] = pl.reciprocal(1.0 + jnp.exp(-logits), approx=True)


def discriminator_forward(x, params, *, tb=1024):
    """x: (B, 1) float32. Returns (B, 1) float32 in [0, 1].

    `tb` is the batch tile (rounded down to a multiple of 128, min 128);
    the batch is zero-padded up to a multiple of `tb` and sliced back.
    """
    (w1, b1), (w2, b2), (w3, b3), (w4, b4) = params
    B = x.shape[0]

    tb = max(128, (tb // 128) * 128)           # lane-dense batch tile
    Bp = ((B + tb - 1) // tb) * tb             # padded batch
    grid = (Bp // tb,)

    # (B, 1) -> (1, Bp): batch goes on the lane axis (lane-dense in & out).
    x_flat = x.reshape(B).astype(jnp.float32)
    if Bp == B:
        x_t = x_flat.reshape(1, Bp)
    else:
        x_t = jnp.zeros((Bp,), jnp.float32).at[:B].set(x_flat).reshape(1, Bp)

    # Pack operands: one stacked hidden-weight tensor + one small-param slab.
    w23 = jnp.stack([w2, w3], axis=0).astype(jnp.float32)      # (2, 128, 128)
    p = jnp.concatenate(
        [w1.reshape(HIDDEN, 1),                                # (128, 1)
         b1.reshape(HIDDEN, 1),
         b2.reshape(HIDDEN, 1),
         b3.reshape(HIDDEN, 1),
         w4.reshape(1, HIDDEN).T,                              # (128, 1)
         jnp.full((HIDDEN, 1), b4.reshape(())[()], jnp.float32)],
        axis=1).astype(jnp.float32)                            # (128, 6)

    flops_per_row = 2 * (HIDDEN + 2 * HIDDEN * HIDDEN + HIDDEN)
    cost = pl.CostEstimate(
        flops=Bp * flops_per_row,
        transcendentals=Bp,
        bytes_accessed=(w23.size + p.size) * 4 + 2 * Bp * 4,
    )

    out_t = pl.pallas_call(
        discriminator_kernel,
        out_shape=jax.ShapeDtypeStruct((1, Bp), jnp.float32),
        grid_spec=pltpu.PrefetchScalarGridSpec(
            num_scalar_prefetch=0,
            grid=grid,
            in_specs=[
                pl.BlockSpec((1, tb), lambda i: (0, i)),
                pl.BlockSpec((2, HIDDEN, HIDDEN), lambda i: (0, 0, 0)),
                pl.BlockSpec((HIDDEN, 6), lambda i: (0, 0)),
            ],
            out_specs=pl.BlockSpec((1, tb), lambda i: (0, i)),
        ),
        compiler_params=pltpu.CompilerParams(
            dimension_semantics=("parallel",),
        ),
        cost_estimate=cost,
    )(x_t, w23, p)

    return out_t[0, :B].reshape(B, 1)


def init_params(key, input_dim=INPUT_DIM, hidden_dim=HIDDEN):
    """PyTorch-native (out_features, in_features) weights with nn.Linear
    default init: U(-1/sqrt(fan_in), 1/sqrt(fan_in)) for weight and bias."""
    dims = [(hidden_dim, input_dim),
            (hidden_dim, hidden_dim),
            (hidden_dim, hidden_dim),
            (1, hidden_dim)]
    params = []
    for (fan_out, fan_in) in dims:
        key, kw, kb = jax.random.split(key, 3)
        bound = 1.0 / (fan_in ** 0.5)
        w = jax.random.uniform(kw, (fan_out, fan_in), jnp.float32, -bound, bound)
        b = jax.random.uniform(kb, (fan_out,), jnp.float32, -bound, bound)
        params.append((w, b))
    return params


def reference_forward(x, params):
    (w1, b1), (w2, b2), (w3, b3), (w4, b4) = params
    h = _leaky_relu(x @ w1.T + b1)
    h = _leaky_relu(h @ w2.T + b2)
    h = _leaky_relu(h @ w3.T + b3)
    return jax.nn.sigmoid(h @ w4.T + b4)


if __name__ == "__main__":
    key = jax.random.PRNGKey(0)
    key, kx = jax.random.split(key)

    batch = 256               # two 128-wide lane tiles -> grid of 2 ("parallel")
    x = jax.random.normal(kx, (batch, INPUT_DIM), jnp.float32)
    params = init_params(jax.random.PRNGKey(0))

    fwd = jax.jit(functools.partial(discriminator_forward, tb=128))
    out = jax.block_until_ready(fwd(x, params))
    ref = reference_forward(x, params)

    assert out.shape == (batch, 1)
    # approx reciprocal in the in-kernel sigmoid -> slightly looser tolerance
    assert jnp.allclose(out, ref, atol=2e-3, rtol=2e-3), "mismatch vs reference"

    print("KERNEL_OK")
</pallas_src>

<mosaic_0001>
module attributes {stable_mosaic.version = 11 : i64} {
  func.func @discriminator_kernel(%arg0: i32, %arg1: memref<1x128xf32, #tpu.memory_space<vmem>>, %arg2: memref<2x128x128xf32, #tpu.memory_space<vmem>>, %arg3: memref<128x6xf32, #tpu.memory_space<vmem>>, %arg4: memref<1x128xf32, #tpu.memory_space<vmem>>) attributes {dimension_semantics = [#tpu.dimension_semantics<parallel>], iteration_bounds = array<i64: 2>, scalar_prefetch = 0 : i64, scratch_operands = 0 : i64, tpu.core_type = #tpu.core_type<tc>, window_params = [{transform_indices = @transform_0, window_bounds = array<i64: 1, 128>}, {pipeline_mode = #tpu.pipeline_mode<synchronous>, transform_indices = @transform_1, window_bounds = array<i64: 2, 128, 128>}, {pipeline_mode = #tpu.pipeline_mode<synchronous>, transform_indices = @transform_2, window_bounds = array<i64: 128, 6>}, {transform_indices = @transform_3, window_bounds = array<i64: 1, 128>}]} {
    %c0 = arith.constant 0 : index
    %c0_0 = arith.constant 0 : index
    %0 = vector.load %arg1[%c0, %c0_0] : memref<1x128xf32, #tpu.memory_space<vmem>>, vector<1x128xf32>
    %c0_1 = arith.constant 0 : index
    %c0_2 = arith.constant 0 : index
    %1 = vector.load %arg3[%c0_1, %c0_2] : memref<128x6xf32, #tpu.memory_space<vmem>>, vector<128x1xf32>
    %c0_3 = arith.constant 0 : index
    %c1 = arith.constant 1 : index
    %2 = vector.load %arg3[%c0_3, %c1] : memref<128x6xf32, #tpu.memory_space<vmem>>, vector<128x1xf32>
    %c0_4 = arith.constant 0 : index
    %c2 = arith.constant 2 : index
    %3 = vector.load %arg3[%c0_4, %c2] : memref<128x6xf32, #tpu.memory_space<vmem>>, vector<128x1xf32>
    %c0_5 = arith.constant 0 : index
    %c3 = arith.constant 3 : index
    %4 = vector.load %arg3[%c0_5, %c3] : memref<128x6xf32, #tpu.memory_space<vmem>>, vector<128x1xf32>
    %c0_6 = arith.constant 0 : index
    %c4 = arith.constant 4 : index
    %5 = vector.load %arg3[%c0_6, %c4] : memref<128x6xf32, #tpu.memory_space<vmem>>, vector<128x1xf32>
    %c0_7 = arith.constant 0 : index
    %c5 = arith.constant 5 : index
    %6 = vector.load %arg3[%c0_7, %c5] : memref<128x6xf32, #tpu.memory_space<vmem>>, vector<1x1xf32>
    %7 = vector.broadcast %1 : vector<128x1xf32> to vector<128x128xf32>
    %8 = vector.broadcast %0 : vector<1x128xf32> to vector<128x128xf32>
    %9 = arith.mulf %7, %8 : vector<128x128xf32>
    %10 = vector.broadcast %2 : vector<128x1xf32> to vector<128x128xf32>
    %11 = arith.addf %9, %10 : vector<128x128xf32>
    %cst = arith.constant 0.000000e+00 : f32
    %12 = vector.broadcast %cst : f32 to vector<128x128xf32>
    %13 = arith.cmpf ogt, %11, %12 : vector<128x128xf32>
    %cst_8 = arith.constant 2.000000e-01 : f32
    %14 = vector.broadcast %cst_8 : f32 to vector<128x128xf32>
    %15 = arith.mulf %14, %11 : vector<128x128xf32>
    %16 = arith.select %13, %11, %15 : vector<128x128xi1>, vector<128x128xf32>
    %c0_9 = arith.constant 0 : index
    %c0_10 = arith.constant 0 : index
    %c0_11 = arith.constant 0 : index
    %17 = vector.load %arg2[%c0_9, %c0_10, %c0_11] : memref<2x128x128xf32, #tpu.memory_space<vmem>>, vector<1x128x128xf32>
    %18 = vector.shape_cast %17 : vector<1x128x128xf32> to vector<128x128xf32>
    %cst_12 = arith.constant dense<0.000000e+00> : vector<128x128xf32>
    %19 = tpu.matmul %18, %16, %cst_12 {dimension_numbers = #tpu.dot_dimension_numbers<[1], [0], [0], [1], [0, 0, 1, 1], [], []>} : vector<128x128xf32>, vector<128x128xf32>, vector<128x128xf32> -> vector<128x128xf32>
    %20 = vector.broadcast %3 : vector<128x1xf32> to vector<128x128xf32>
    %21 = arith.addf %19, %20 : vector<128x128xf32>
    %cst_13 = arith.constant 0.000000e+00 : f32
    %22 = vector.broadcast %cst_13 : f32 to vector<128x128xf32>
    %23 = arith.cmpf ogt, %21, %22 : vector<128x128xf32>
    %cst_14 = arith.constant 2.000000e-01 : f32
    %24 = vector.broadcast %cst_14 : f32 to vector<128x128xf32>
    %25 = arith.mulf %24, %21 : vector<128x128xf32>
    %26 = arith.select %23, %21, %25 : vector<128x128xi1>, vector<128x128xf32>
    %c1_15 = arith.constant 1 : index
    %c0_16 = arith.constant 0 : index
    %c0_17 = arith.constant 0 : index
    %27 = vector.load %arg2[%c1_15, %c0_16, %c0_17] : memref<2x128x128xf32, #tpu.memory_space<vmem>>, vector<1x128x128xf32>
    %28 = vector.shape_cast %27 : vector<1x128x128xf32> to vector<128x128xf32>
    %cst_18 = arith.constant dense<0.000000e+00> : vector<128x128xf32>
    %29 = tpu.matmul %28, %26, %cst_18 {dimension_numbers = #tpu.dot_dimension_numbers<[1], [0], [0], [1], [0, 0, 1, 1], [], []>} : vector<128x128xf32>, vector<128x128xf32>, vector<128x128xf32> -> vector<128x128xf32>
    %30 = vector.broadcast %4 : vector<128x1xf32> to vector<128x128xf32>
    %31 = arith.addf %29, %30 : vector<128x128xf32>
    %cst_19 = arith.constant 0.000000e+00 : f32
    %32 = vector.broadcast %cst_19 : f32 to vector<128x128xf32>
    %33 = arith.cmpf ogt, %31, %32 : vector<128x128xf32>
    %cst_20 = arith.constant 2.000000e-01 : f32
    %34 = vector.broadcast %cst_20 : f32 to vector<128x128xf32>
    %35 = arith.mulf %34, %31 : vector<128x128xf32>
    %36 = arith.select %33, %31, %35 : vector<128x128xi1>, vector<128x128xf32>
    %37 = vector.broadcast %5 : vector<128x1xf32> to vector<128x128xf32>
    %38 = arith.mulf %37, %36 : vector<128x128xf32>
    %cst_21 = arith.constant dense<0.000000e+00> : vector<128xf32>
    %39 = vector.multi_reduction <add>, %38, %cst_21 [0] : vector<128x128xf32> to vector<128xf32>
    %40 = vector.shape_cast %39 : vector<128xf32> to vector<1x128xf32>
    %41 = vector.broadcast %6 : vector<1x1xf32> to vector<1x128xf32>
    %42 = arith.addf %40, %41 : vector<1x128xf32>
    %cst_22 = arith.constant 0.000000e+00 : f32
    %43 = vector.broadcast %cst_22 : f32 to vector<1x128xf32>
    %44 = arith.subf %43, %42 : vector<1x128xf32>
    %45 = math.exp %44 : vector<1x128xf32>
    %cst_23 = arith.constant 1.000000e+00 : f32
    %46 = vector.broadcast %cst_23 : f32 to vector<1x128xf32>
    %47 = arith.addf %46, %45 : vector<1x128xf32>
    %48 = tpu.reciprocal %47 {approx = true} : vector<1x128xf32> -> vector<1x128xf32>
    %c0_24 = arith.constant 0 : index
    %c0_25 = arith.constant 0 : index
    %49 = vector.load %arg4[%c0_24, %c0_25] : memref<1x128xf32, #tpu.memory_space<vmem>>, vector<1x128xf32>
    tpu.vector_store %arg4[%c0_24, %c0_25], %48 {strides = array<i32>} : memref<1x128xf32, #tpu.memory_space<vmem>>, vector<1x128xf32>,
    return
  }
  func.func @transform_0(%arg0: i32) -> (i32, i32) {
    %c0_i32 = arith.constant 0 : i32
    %c0_i32_0 = arith.constant 0 : i32
    return %c0_i32, %arg0 : i32, i32
  }
  func.func @transform_1(%arg0: i32) -> (i32, i32, i32) {
    %c0_i32 = arith.constant 0 : i32
    %c0_i32_0 = arith.constant 0 : i32
    %c0_i32_1 = arith.constant 0 : i32
    %c0_i32_2 = arith.constant 0 : i32
    return %c0_i32, %c0_i32_0, %c0_i32_1 : i32, i32, i32
  }
  func.func @transform_2(%arg0: i32) -> (i32, i32) {
    %c0_i32 = arith.constant 0 : i32
    %c0_i32_0 = arith.constant 0 : i32
    %c0_i32_1 = arith.constant 0 : i32
    return %c0_i32, %c0_i32_0 : i32, i32
  }
  func.func @transform_3(%arg0: i32) -> (i32, i32) {
    %c0_i32 = arith.constant 0 : i32
    %c0_i32_0 = arith.constant 0 : i32
    return %c0_i32, %arg0 : i32, i32
  }
}

</mosaic_0001>

<bundles_post_ra>
// kernel: discriminator_forward.1
= control target key start
LH: loop header
LB: loop body
LE: loop exit
PB: predicated region body
PF: predicated region fallthrough
CT: control target
= control target key end

     0   :  { %8 = vsyncpa [#allocation3], 0  ;;  %s2015_s0 = inlined_call_operand.vmem [shape: f32[1,256], index: 0, kind: input, shape index: {}]   ;;  %s2016_s1 = inlined_call_operand.vmem [shape: f32[2,128,128], index: 1, kind: input, shape index: {}]   ;;  %s2017_s2 = inlined_call_operand.vmem [shape: f32[128,6], index: 2, kind: input, shape index: {}]   ;;  %s2018_s3 = inlined_call_operand.hbm [shape: f32[1,256], index: 3, kind: output, shape index: {}]  }
   0x1   :  { %10 = vsyncpa [#allocation3 + $0x1], 0  ;;  %s1576_s12 = smov 0   ;;  %s1578_s13 = smov 0  }
   0x2   :  { %s1580_s14 = smov 0   ;;  %s1582_s15 = smov 0  }
   0x3 LB: > { %s1597_s16 = sadd.s32 4294967295, %s1547_s15   ;;  %s1135_s17 = sadd.s32 4294967294, %s1547_s15   ;;  %s1547_s15 = sphi %s1582_s15, %s2024_s15   ;;  %s1543_s14 = sphi %s1580_s14, %s2023_s14   ;;  %s1539_s13 = sphi %s1578_s13, %s2022_s13   ;;  %s1535_s12 = sphi %s1576_s12, %s2021_s12  }
   0x4   : > { %s1601_s18 = sadd.s32 1, %s1547_s15   ;;  %s91_s19 = sadd.s32 1, %s1543_s14 }
   0x5   : > { %s88_s20 = ssub.s32 %s1547_s15, %s1601_s18  ;;  %p101_p0 = scmp.ne.s32.totalorder %s1543_s14, %s1539_s13 }
   0x6   : > { %p89_p1 = scmp.eq.s32.totalorder %s88_s20, 0  ;;  %p102_p2 = scmp.eq.s32.totalorder %s1597_s16, 1 }
   0x7   : > { %p107_p3 = scmp.ne.s32.totalorder %s1539_s13, %s1535_s12  ;;  %p108_p4 = scmp.eq.s32.totalorder %s1135_s17, 1 }
   0x8   : > { %s1612_s21 = scalar_select %p89_p1, %s1543_s14, %s91_s19  }
   0x9   : > { %p1614_p5 = por %p102_p2, %p101_p0  ;;  %p1618_p6 = por %p108_p4, %p107_p3 }
   0xa   : > { %p1138_p7 = scmp.ge.s32.totalorder %s1547_s15, 1  ;;  %p138_p8 = scmp.lt.s32.totalorder %s1547_s15, 3 }
   0xc   : > { %p139_p9 = pnand %p1138_p7, %p138_p8 }
   0xd   : > { %v1627_v0 = vld [vmem:[%s2017_s2 + $0x10] sm:$0xff] (!%p139_p9)  ;;  %v1632_v1 = vld [vmem:[%s2017_s2] sm:$0xff] (!%p139_p9)  ;;  %v1549_v2 = vmov (!%p139_p9), 1   ;;  %v1646_v4 = vld [vmem:[%s2017_s2 + $0x8] sm:$0xff] (!%p139_p9)  ;;  %v1550_v7 = vmov (!%p139_p9), 0   ;;  %v1551_v19 = vmov (!%p139_p9), 2  }
   0xe   : > { %142 = sbr.rel (%p139_p9) target bundleno = 800 (0x320), region = 32  ;;  %1446 = vset.pattern.permute.xlu0 (!%p139_p9), %v1549_v2  ;;  %1444 = vset.pattern.permute.xlu1 (!%p139_p9), %v1549_v2  ;;  %v1641_v3 = vld [vmem:[%s2017_s2 + $0x30] sm:$0xff] (!%p139_p9)  ;;  %v1658_v6 = vld [vmem:[%s2017_s2 + $0x18] sm:$0xff] (!%p139_p9)  ;;  %v1668_v8 = vld [vmem:[%s2017_s2 + $0x20] sm:$0xff] (!%p139_p9)  ;;  %p159_p10 = scmp.lt.s32.totalorder (!%p139_p9), %s1597_s16, 1 }
   0xf   : > { %291 = vperm.xlu0 (!%p139_p9), %1446, %v1627_v0   ;;  %283 = vperm.xlu1 (!%p139_p9), %1444, %v1632_v1   ;;  %v1653_v5 = vld [vmem:[%s2017_s2 + $0x50] sm:$0xff] (!%p139_p9)  ;;  %v1676_v9 = vld [vmem:[%s2017_s2 + $0x28] sm:$0xff] (!%p139_p9)  ;;  %v1691_v11 = vld [vmem:[%s2017_s2 + $0x38] sm:$0xff] (!%p139_p9)  ;;  %s157_s9 = sand.u32 (!%p139_p9), 1, %s1539_s13   ;;  %s1156_s10 = sshll.u32 (!%p139_p9), %s1597_s16, 4 }
  0x10   : > { %v1686_v10 = vld [vmem:[%s2017_s2 + $0x48] sm:$0xff] (!%p139_p9)  ;;  %v1706_v13 = vld [vmem:[%s2017_s2 + $0x40] sm:$0xff] (!%p139_p9)  ;;  %v1712_v14 = vld [vmem:[%s2017_s2 + $0x70] sm:$0xff] (!%p139_p9)  ;;  %s158_s11 = scalar_lea.vmem (!%p139_p9), [#allocation2], %s157_s9  ;;  %s1973_s24 = scalar_lea.hbm (!%p139_p9), %s2018_s3, %s1156_s10 }
  0x11   : > { %v1701_v12 = vld [vmem:[%s2017_s2 + $0x68] sm:$0xff] (!%p139_p9)  ;;  %v1724_v15 = vld [vmem:[%s2017_s2 + $0x58] sm:$0xff] (!%p139_p9)  ;;  %v1732_v16 = vld [vmem:[%s2017_s2 + $0x60] sm:$0xff] (!%p139_p9)  ;;  %s1083_s17 = sshll.u32 (!%p139_p9), %s158_s11, 4  ;;  %s1975_s17 = int_to_ptr.vmem [resolvable:$true] %s1083_s17 }
  0x12   : > { %v1741_v17 = vld [vmem:[%s2017_s2 + $0x78] sm:$0xff] (!%p139_p9)  ;;  %v410_v18 = vld [vmem:[%s2016_s1] sm:$0xff] (!%p139_p9)  ;;  %s1485_s26 = scalar_lea.vmem (!%p139_p9), %s1975_s17, 16 }
  0x13   : > { %307 = vperm.xlu0 (!%p139_p9), %1446, %v1641_v3   ;;  %287 = vperm.xlu1 (!%p139_p9), %1444, %v1646_v4   ;;  %p1486_p11 = scmp.ne.s32.totalorder (!%p139_p9), %s1975_s17, %s1485_s26 }
  0x14   : > { %1255 = vmatprep.mubr.f32.mxu0 (!%p139_p9), %v410_v18 }
  0x15   : > { %s160_s19 = scalar_select %p159_p10, %s1597_s16, 1 }
  0x16   : > { %p1487_p12 = pnand %p1486_p11, %p1614_p5  ;;  %s1555_s16 = smov [#allocation2]  }
  0x17   : > { %323 = vperm.xlu0 %1446, %v1653_v5   ;;  %1445 = vset.pattern.permute.xlu1 %v1550_v7  ;;  %s161_s25 = scalar_lea.vmem %s2015_s0, %s160_s19  ;;  %s1489_s27 = sshll.u32 %s1555_s16, 4  ;;  %s1490_s27 = int_to_ptr.vmem [resolvable:$false] %s1489_s27 }
  0x18   : > { %197 = vperm.xlu1 %1445, %v1658_v6   ;;  %v1766_v26 = vld [vmem:[%s161_s25] ss:$0 sm:$0xff]  ;;  %s1071_s25 = scalar_lea.sflag [#allocation3], %s157_s9  ;;  %p1488_p13 = pneg %p1487_p12 }
  0x19   : > { %s1491_s28 = scalar_lea.vmem %s1490_s27, 32  ;;  %p1492_p0 = scmp.lt.s32.totalorder %s1975_s17, %s1490_s27 }
  0x1a   : > { %p1493_p1 = scmp.lt.s32.totalorder %s1491_s28, %s1485_s26 }
  0x1b   : > { %1455 = vset.pattern.permute.xlu0 %v1550_v7 }
  0x1c   : > { %182 = vperm.xlu0 %1455, %v1632_v1   ;;  %1447 = vset.pattern.permute.xlu1 %v1549_v2  ;;  %p1494_p2 = por %p1493_p1, %p1492_p0 }
  0x1d   : > { %295 = vperm.xlu1 %1447, %v1658_v6  }
  0x1e   : > { %p1495_p3 = pnand %p1494_p2, %p1488_p13 }
  0x20   : > { %187 = vperm.xlu0 %1455, %v1646_v4  }
  0x21   : > { %1448 = vset.pattern.permute.xlu1 %v1550_v7 }
  0x22   : > { %202 = vperm.xlu1 %1448, %v1668_v8  }
  0x24   : > { %192 = vperm.xlu0 %1455, %v1627_v0  }
  0x26   : > { %1449 = vset.pattern.permute.xlu1 %v1549_v2 }
  0x27   : > { %299 = vperm.xlu1 %1449, %v1668_v8  }
  0x28   : > { %207 = vperm.xlu0 %1455, %v1676_v9  }
  0x2b   : > { %303 = vperm.xlu1 %1449, %v1676_v9  }
  0x2c   : > { %212 = vperm.xlu0 %1455, %v1641_v3  }
  0x2f   : > { %1450 = vset.pattern.permute.xlu1 %v1550_v7 }
  0x30   : > { %227 = vperm.xlu0 %1455, %v1686_v10   ;;  %217 = vperm.xlu1 %1450, %v1691_v11  }
  0x34   : > { %232 = vperm.xlu0 %1455, %v1653_v5   ;;  %1451 = vset.pattern.permute.xlu1 %v1549_v2 }
  0x35   : > { %311 = vperm.xlu1 %1451, %v1691_v11  }
  0x38   : > { %247 = vperm.xlu0 %1455, %v1701_v12  }
  0x39   : > { %1452 = vset.pattern.permute.xlu1 %v1550_v7 }
  0x3a   : > { %222 = vperm.xlu1 %1452, %v1706_v13  }
  0x3c   : > { %252 = vperm.xlu0 %1455, %v1712_v14  }
  0x3e   : > { %1453 = vset.pattern.permute.xlu1 %v1549_v2 }
  0x3f   : > { %315 = vperm.xlu1 %1453, %v1706_v13  }
  0x40   : > { %1460 = vset.pattern.permute.xlu0 %v1549_v2 }
  0x41   : > { %339 = vperm.xlu0 %1460, %v1712_v14  }
  0x43   : > { %319 = vperm.xlu1 %1453, %v1686_v10  }
  0x45   : > { %1463 = vset.pattern.permute.xlu0 %v1551_v19 }
  0x46   : > { %431 = vperm.xlu0 %1463, %v1646_v4  }
  0x47   : > { %1454 = vset.pattern.permute.xlu1 %v1550_v7 }
  0x48   : > { %237 = vperm.xlu1 %1454, %v1724_v15  }
  0x4a   : > { %443 = vperm.xlu0 %1463, %v1668_v8  }
  0x4c   : > { %1456 = vset.pattern.permute.xlu1 %v1549_v2 }
  0x4d   : > { %327 = vperm.xlu1 %1456, %v1724_v15  }
  0x4e   : > { %451 = vperm.xlu0 %1463, %v1641_v3  }
  0x51   : > { %1457 = vset.pattern.permute.xlu1 %v1550_v7 }
  0x52   : > { %242 = vperm.xlu1 %1457, %v1732_v16   ;;  %459 = vperm.xlu0 %1463, %v1706_v13  }
  0x56   : > { %1458 = vset.pattern.permute.xlu1 %v1549_v2  ;;  %467 = vperm.xlu0 %1463, %v1653_v5  }
  0x57   : > { %331 = vperm.xlu1 %1458, %v1732_v16  }
  0x5a   : > { %475 = vperm.xlu0 %1463, %v1732_v16  }
  0x5b   : > { %335 = vperm.xlu1 %1458, %v1701_v12  }
  0x5e   : > { %483 = vperm.xlu0 %1463, %v1712_v14  }
  0x5f   : > { %1459 = vset.pattern.permute.xlu1 %v1550_v7 }
  0x60   : > { %257 = vperm.xlu1 %1459, %v1741_v17  }
  0x64   : > { %1461 = vset.pattern.permute.xlu1 %v1549_v2 }
  0x65   : > { %343 = vperm.xlu1 %1461, %v1741_v17  }
  0x69   : > { %1462 = vset.pattern.permute.xlu1 %v1551_v19 }
  0x6a   : > { %427 = vperm.xlu1 %1462, %v1632_v1  }
  0x6e   : > { %435 = vperm.xlu1 %1462, %v1627_v0  }
  0x72   : > { %439 = vperm.xlu1 %1462, %v1658_v6  }
  0x76   : > { %447 = vperm.xlu1 %1462, %v1676_v9  }
  0x7a   : > { %455 = vperm.xlu1 %1462, %v1691_v11  }
  0x7e   : > { %463 = vperm.xlu1 %1462, %v1686_v10  }
  0x82   : > { %471 = vperm.xlu1 %1462, %v1724_v15  }
  0x86   : > { %479 = vperm.xlu1 %1462, %v1701_v12  }
  0x8a   : > { %487 = vperm.xlu1 %1462, %v1741_v17  }
  0x8e   : > { %v284_v20 = vpop.permute.xlu1 %283  ;;  %v292_v21 = vpop.permute.xlu0 %291 }
  0x92   : > { %v288_v22 = vpop.permute.xlu1 %287  ;;  %v1752_v23 = vpop.permute.xlu0 %307 }
  0x96   : > { %v1757_v24 = vpop.permute.xlu0 %323 }
  0x97   : > { %v198_v25 = vpop.permute.xlu1 %197 }
  0x98   : > { %v269_v32 = vmul.f32 %v1766_v26, %v198_v25 }
  0x9b   : > { %v183_v27 = vpop.permute.xlu0 %182 }
  0x9c   : > { %v266_v28 = vmul.f32 %v1766_v26, %v183_v27  ;;  %v296_v29 = vpop.permute.xlu1 %295 }
  0x9d   : > { %v349_v35 = vadd.f32 %v296_v29, %v269_v32 }
  0x9e   : > { %v346_v30 = vadd.f32 %v284_v20, %v266_v28 }
  0x9f   : > { %v188_v31 = vpop.permute.xlu0 %187  ;;  %v381_v42 = vmul.f32 0.2, %v349_v35  ;;  %vm365_vm2 = vcmp.gt.f32.partialorder %v349_v35, 0.0 }
  0xa0   : > { %v267_v33 = vmul.f32 %v1766_v26, %v188_v31  ;;  %v378_v37 = vmul.f32 0.2, %v346_v30  ;;  %vm362_vm0 = vcmp.gt.f32.partialorder %v346_v30, 0.0 }
  0xa1   : > { %v203_v34 = vpop.permute.xlu1 %202  ;;  %v397_v54 = vsel %vm365_vm2, %v349_v35, %v381_v42 }
  0xa2   : > { %v347_v36 = vadd.f32 %v288_v22, %v267_v33  ;;  %v270_v41 = vmul.f32 %v1766_v26, %v203_v34  ;;  %v394_v45 = vsel %vm362_vm0, %v346_v30, %v378_v37 }
  0xa3   : > { %v193_v38 = vpop.permute.xlu0 %192 }
  0xa4   : > { %v268_v39 = vmul.f32 %v1766_v26, %v193_v38  ;;  %vm363_vm1 = vcmp.gt.f32.partialorder %v347_v36, 0.0  ;;  %v379_v40 = vmul.f32 0.2, %v347_v36 }
  0xa6   : > { %v348_v43 = vadd.f32 %v292_v21, %v268_v39  ;;  %v300_v44 = vpop.permute.xlu1 %299  ;;  %v395_v46 = vsel %vm363_vm1, %v347_v36, %v379_v40 }
  0xa7   : > { %v208_v47 = vpop.permute.xlu0 %207  ;;  %v1335_v48 = vpack.c.bf16 %v395_v46, %v394_v45  ;;  %v350_v50 = vadd.f32 %v300_v44, %v270_v41 }
  0xa8   : > { %vm364_vm3 = vcmp.gt.f32.partialorder %v348_v43, 0.0  ;;  %v380_v49 = vmul.f32 0.2, %v348_v43  ;;  %v271_v51 = vmul.f32 %v1766_v26, %v208_v47 }
  0xa9   : > { %1336 = vmatprep.subr.bf16.mxu0 %v1335_v48  ;;  %v382_v57 = vmul.f32 0.2, %v350_v50  ;;  %vm366_vm4 = vcmp.gt.f32.partialorder %v350_v50, 0.0 }
  0xaa   : > { %v304_v52 = vpop.permute.xlu1 %303  ;;  %1338 = vmatpush3.bf16.msra.mxu0 %v1335_v48  ;;  %v396_v53 = vsel %vm364_vm3, %v348_v43, %v380_v49 }
  0xab   : > { %v351_v55 = vadd.f32 %v304_v52, %v271_v51  ;;  %v1339_v56 = vpack.c.bf16 %v397_v54, %v396_v53  ;;  %v213_v58 = vpop.permute.xlu0 %212  ;;  %v398_v63 = vsel %vm366_vm4, %v350_v50, %v382_v57 }
  0xac   : > { %v272_v60 = vmul.f32 %v1766_v26, %v213_v58 }
  0xad   : > { %vm367_vm5 = vcmp.gt.f32.partialorder %v351_v55, 0.0  ;;  %v383_v59 = vmul.f32 0.2, %v351_v55  ;;  %1340 = vmatprep.subr.bf16.mxu0 %v1339_v56 }
  0xae   : > { %1342 = vmatpush3.bf16.msra.mxu0 %v1339_v56  ;;  %v352_v2 = vadd.f32 %v1752_v23, %v272_v60 }
  0xaf   : > { %v218_v61 = vpop.permute.xlu1 %217  ;;  %v399_v62 = vsel %vm367_vm5, %v351_v55, %v383_v59  ;;  %v228_v30 = vpop.permute.xlu0 %227 }
  0xb0   : > { %v1343_v7 = vpack.c.bf16 %v399_v62, %v398_v63  ;;  %v273_v18 = vmul.f32 %v1766_v26, %v218_v61  ;;  %v384_v20 = vmul.f32 0.2, %v352_v2  ;;  %vm368_vm6 = vcmp.gt.f32.partialorder %v352_v2, 0.0 }
  0xb1   : > { %v275_v32 = vmul.f32 %v1766_v26, %v228_v30 }
  0xb2   : > { %1344 = vmatprep.subr.bf16.mxu0 %v1343_v7  ;;  %v400_v27 = vsel %vm368_vm6, %v352_v2, %v384_v20 }
  0xb3   : > { %1346 = vmatpush3.bf16.msra.mxu0 %v1343_v7  ;;  %v233_v34 = vpop.permute.xlu0 %232 }
  0xb4   : > { %v312_v19 = vpop.permute.xlu1 %311  ;;  %v276_v38 = vmul.f32 %v1766_v26, %v233_v34  ;;  %v414_v34 = vld [vmem:[%s2016_s1 + $0x20] sm:$0xff] }
  0xb5   : > { %v353_v21 = vadd.f32 %v312_v19, %v273_v18 }
  0xb6   : > { %v356_v44 = vadd.f32 %v1757_v24, %v276_v38  ;;  %v418_v38 = vld [vmem:[%s2016_s1 + $0x40] sm:$0xff] }
  0xb7   : > { %vm369_vm7 = vcmp.gt.f32.partialorder %v353_v21, 0.0  ;;  %v385_v22 = vmul.f32 0.2, %v353_v21  ;;  %v248_v53 = vpop.permute.xlu0 %247 }
  0xb8   : > { %v388_v47 = vmul.f32 0.2, %v356_v44  ;;  %vm372_vm10 = vcmp.gt.f32.partialorder %v356_v44, 0.0  ;;  %v279_v58 = vmul.f32 %v1766_v26, %v248_v53 }
  0xb9   : > { %v223_v25 = vpop.permute.xlu1 %222  ;;  %v401_v28 = vsel %vm369_vm7, %v353_v21, %v385_v22 }
  0xba   : > { %v1347_v29 = vpack.c.bf16 %v401_v28, %v400_v27  ;;  %v274_v31 = vmul.f32 %v1766_v26, %v223_v25  ;;  %v404_v51 = vsel %vm372_vm10, %v356_v44, %v388_v47  ;;  %v424_v44 = vld [vmem:[%s2016_s1 + $0x70] sm:$0xff]  ;;  %v1552_v47 = vmov 3  }
  0xbb   : > { %v253_v57 = vpop.permute.xlu0 %252  ;;  %1465 = vset.pattern.permute.xlu1 %v1552_v47  ;;  %1464 = vset.pattern.permute.xlu0 %v1552_v47 }
  0xbc   : > { %1348 = vmatprep.subr.bf16.mxu0 %v1347_v29  ;;  %v280_v62 = vmul.f32 %v1766_v26, %v253_v57  ;;  %705 = vperm.xlu1 %1465, %v1646_v4  }
  0xbd   : > { %1350 = vmatpush3.bf16.msra.mxu0 %v1347_v29  ;;  %701 = vperm.xlu0 %1464, %v1632_v1  }
  0xbe   : > { %v316_v23 = vpop.permute.xlu1 %315 }
  0xbf   : > { %v354_v33 = vadd.f32 %v316_v23, %v274_v31 }
  0xc0   : > { %v340_v2 = vpop.permute.xlu0 %339  ;;  %709 = vperm.xlu1 %1465, %v1627_v0  }
  0xc1   : > { %v386_v36 = vmul.f32 0.2, %v354_v33  ;;  %vm370_vm8 = vcmp.gt.f32.partialorder %v354_v33, 0.0  ;;  %v360_v21 = vadd.f32 %v340_v2, %v280_v62  ;;  %713 = vperm.xlu0 %1464, %v1658_v6  }
  0xc2   : > { %v320_v35 = vpop.permute.xlu1 %319 }
  0xc3   : > { %v355_v37 = vadd.f32 %v320_v35, %v275_v32  ;;  %v402_v41 = vsel %vm370_vm8, %v354_v33, %v386_v36  ;;  %v392_v27 = vmul.f32 0.2, %v360_v21  ;;  %vm376_vm14 = vcmp.gt.f32.partialorder %v360_v21, 0.0  ;;  %v411_v32 = vld [vmem:[%s2016_s1 + $0x8] sm:$0xff]  ;;  %v413_v33 = vld [vmem:[%s2016_s1 + $0x18] sm:$0xff]  ;;  %v416_v36 = vld [vmem:[%s2016_s1 + $0x30] sm:$0xff] }
  0xc4   : > { %v415_v35 = vld [vmem:[%s2016_s1 + $0x28] sm:$0xff] }
  0xc5   : > { %vm371_vm9 = vcmp.gt.f32.partialorder %v355_v37, 0.0  ;;  %v387_v39 = vmul.f32 0.2, %v355_v37  ;;  %v408_v30 = vsel %vm376_vm14, %v360_v21, %v392_v27  ;;  %721 = vperm.xlu0 %1464, %v1676_v9  }
  0xc7   : > { %v238_v40 = vpop.permute.xlu1 %237  ;;  %v403_v42 = vsel %vm371_vm9, %v355_v37, %v387_v39  ;;  %v417_v37 = vld [vmem:[%s2016_s1 + $0x38] sm:$0xff]  ;;  %v419_v39 = vld [vmem:[%s2016_s1 + $0x48] sm:$0xff] }
  0xc8   : > { %v1351_v43 = vpack.c.bf16 %v403_v42, %v402_v41  ;;  %v277_v45 = vmul.f32 %v1766_v26, %v238_v40  ;;  %v420_v40 = vld [vmem:[%s2016_s1 + $0x50] sm:$0xff]  ;;  %v421_v41 = vld [vmem:[%s2016_s1 + $0x58] sm:$0xff]  ;;  %v422_v42 = vld [vmem:[%s2016_s1 + $0x60] sm:$0xff] }
  0xca   : > { %1352 = vmatprep.subr.bf16.mxu0 %v1351_v43 }
  0xcb   : > { %1354 = vmatpush3.bf16.msra.mxu0 %v1351_v43  ;;  %v423_v43 = vld [vmem:[%s2016_s1 + $0x68] sm:$0xff] }
  0xcc   : > { %v328_v46 = vpop.permute.xlu1 %327 }
  0xcd   : > { %v357_v48 = vadd.f32 %v328_v46, %v277_v45  ;;  %v425_v45 = vld [vmem:[%s2016_s1 + $0x78] sm:$0xff]  ;;  %v1140_v46 = vld [vmem:[%s2016_s1 + $0x80] sm:$0xff] }
  0xce   : > { %1311 = vmatprep.mubr.f32.mxu1 %v1140_v46 }
  0xcf   : > { %vm373_vm11 = vcmp.gt.f32.partialorder %v357_v48, 0.0  ;;  %v389_v49 = vmul.f32 0.2, %v357_v48 }
  0xd1   : > { %v243_v50 = vpop.permute.xlu1 %242  ;;  %v405_v52 = vsel %vm373_vm11, %v357_v48, %v389_v49  ;;  %v1553_v48 = vmov 4  }
  0xd2   : > { %v1355_v54 = vpack.c.bf16 %v405_v52, %v404_v51  ;;  %v278_v55 = vmul.f32 %v1766_v26, %v243_v50  ;;  %1466 = vset.pattern.permute.xlu1 %v1553_v48  ;;  %1469 = vset.pattern.permute.xlu0 %v1553_v48 }
  0xd3   : > { %958 = vperm.xlu1 %1466, %v1632_v1   ;;  %962 = vperm.xlu0 %1469, %v1646_v4   ;;  %v179_v1 = vld [vmem:[%s2017_s2] sm:$0x1]  ;;  %v1554_v4 = vmov 5  }
  0xd4   : > { %1356 = vmatprep.subr.bf16.mxu0 %v1355_v54 }
  0xd5   : > { %1358 = vmatpush3.bf16.msra.mxu0 %v1355_v54 }
  0xd6   : > { %v332_v24 = vpop.permute.xlu1 %331 }
  0xd7   : > { %v358_v56 = vadd.f32 %v332_v24, %v278_v55  ;;  %1467 = vset.pattern.permute.xlu1 %v1552_v47  ;;  %974 = vperm.xlu0 %1469, %v1668_v8  }
  0xd8   : > { %717 = vperm.xlu1 %1467, %v1668_v8   ;;  %v432_v8 = vpop.permute.xlu0 %431 }
  0xd9   : > { %v390_v60 = vmul.f32 0.2, %v358_v56  ;;  %vm374_vm12 = vcmp.gt.f32.partialorder %v358_v56, 0.0 }
  0xda   : > { %v336_v59 = vpop.permute.xlu1 %335 }
  0xdb   : > { %v359_v61 = vadd.f32 %v336_v59, %v279_v58  ;;  %v406_v18 = vsel %vm374_vm12, %v358_v56, %v390_v60  ;;  %986 = vperm.xlu0 %1469, %v1691_v11  }
  0xdc   : > { %1468 = vset.pattern.permute.xlu1 %v1553_v48 }
  0xdd   : > { %vm375_vm13 = vcmp.gt.f32.partialorder %v359_v61, 0.0  ;;  %v391_v63 = vmul.f32 0.2, %v359_v61  ;;  %966 = vperm.xlu1 %1468, %v1627_v0  }
  0xdf   : > { %v258_v7 = vpop.permute.xlu1 %257  ;;  %v407_v19 = vsel %vm375_vm13, %v359_v61, %v391_v63  ;;  %998 = vperm.xlu0 %1469, %v1653_v5  }
  0xe0   : > { %v1359_v20 = vpack.c.bf16 %v407_v19, %v406_v18  ;;  %v281_v22 = vmul.f32 %v1766_v26, %v258_v7  ;;  %v412_v26 = vld [vmem:[%s2016_s1 + $0x10] sm:$0xff] }
  0xe1   : > { %970 = vperm.xlu1 %1468, %v1658_v6  }
  0xe2   : > { %1360 = vmatprep.subr.bf16.mxu0 %v1359_v20 }
  0xe3   : > { %1362 = vmatpush3.bf16.msra.mxu0 %v1359_v20  ;;  %1475 = vset.pattern.permute.xlu0 %v1552_v47 }
  0xe4   : > { %v344_v25 = vpop.permute.xlu1 %343  ;;  %733 = vperm.xlu0 %1475, %v1706_v13  }
  0xe5   : > { %v361_v28 = vadd.f32 %v344_v25, %v281_v22  ;;  %1470 = vset.pattern.permute.xlu1 %v1552_v47 }
  0xe6   : > { %725 = vperm.xlu1 %1470, %v1641_v3  }
  0xe7   : > { %vm377_vm15 = vcmp.gt.f32.partialorder %v361_v28, 0.0  ;;  %v393_v29 = vmul.f32 0.2, %v361_v28 }
  0xe8   : > { %745 = vperm.xlu0 %1475, %v1724_v15  }
  0xe9   : > { %v409_v31 = vsel %vm377_vm15, %v361_v28, %v393_v29  ;;  %v428_v0 = vpop.permute.xlu1 %427 }
  0xea   : > { %v1363_v23 = vpack.c.bf16 %v409_v31, %v408_v30  ;;  %729 = vperm.xlu1 %1470, %v1691_v11   ;;  %v444_v11 = vpop.permute.xlu0 %443 }
  0xec   : > { %1364 = vmatprep.subr.bf16.mxu0 %v1363_v23  ;;  %757 = vperm.xlu0 %1475, %v1712_v14  }
  0xed   : > { %1366 = vmatpush3.bf16.msra.mxu0 %v1363_v23  ;;  %v436_v6 = vpop.permute.xlu1 %435 }
  0xee   : > { %1471 = vset.pattern.permute.xlu1 %v1553_v48 }
  0xef   : > { %978 = vperm.xlu1 %1471, %v1676_v9  }
  0xf0   : > { %1256 = vmatmul.mubr.f32.vlgmr.msra.gmra.mrb[0].mxu0 %v411_v32  ;;  %1478 = vset.pattern.permute.xlu0 %v1553_v48 }
  0xf1   : > { %1258 = vmatprep.mubr.f32.mxu0 %v412_v26  ;;  %1010 = vperm.xlu0 %1478, %v1701_v12  }
  0xf3   : > { %982 = vperm.xlu1 %1471, %v1641_v3   ;;  %v440_v3 = vpop.permute.xlu1 %439 }
  0xf4   : > { %1259 = vmatmul.mubr.f32.gmra.mrb[2].mxu0 %v413_v33 }
  0xf5   : > { %1261 = vmatprep.mubr.f32.mxu0 %v414_v34  ;;  %1480 = vset.pattern.permute.xlu0 %v1554_v4 }
  0xf6   : > { %1060 = vperm.xlu0 %1480, %v179_v1  }
  0xf7   : > { %1472 = vset.pattern.permute.xlu1 %v1552_v47  ;;  %v448_v9 = vpop.permute.xlu1 %447 }
  0xf8   : > { %1262 = vmatmul.mubr.f32.gmra.mrb[4].mxu0 %v415_v35  ;;  %737 = vperm.xlu1 %1472, %v1686_v10  }
  0xf9   : > { %1264 = vmatprep.mubr.f32.mxu0 %v416_v36 }
  0xfc   : > { %1265 = vmatmul.mubr.f32.gmra.mrb[6].mxu0 %v417_v37  ;;  %741 = vperm.xlu1 %1472, %v1653_v5   ;;  %v456_v5 = vpop.permute.xlu1 %455 }
  0xfd   : > { %1267 = vmatprep.mubr.f32.mxu0 %v418_v38 }
 0x100   : > { %1268 = vmatmul.mubr.f32.gmra.mrb[8].mxu0 %v419_v39  ;;  %1473 = vset.pattern.permute.xlu1 %v1553_v48 }
 0x101   : > { %1270 = vmatprep.mubr.f32.mxu0 %v420_v40  ;;  %990 = vperm.xlu1 %1473, %v1706_v13   ;;  %v452_v13 = vpop.permute.xlu0 %451 }
 0x104   : > { %1271 = vmatmul.mubr.f32.gmra.mrb[10].mxu0 %v421_v41 }
 0x105   : > { %1273 = vmatprep.mubr.f32.mxu0 %v422_v42  ;;  %994 = vperm.xlu1 %1473, %v1686_v10   ;;  %v460_v20 = vpop.permute.xlu0 %459 }
 0x108   : > { %1274 = vmatmul.mubr.f32.gmra.mrb[12].mxu0 %v423_v43 }
 0x109   : > { %1276 = vmatprep.mubr.f32.mxu0 %v424_v44  ;;  %1474 = vset.pattern.permute.xlu1 %v1552_v47  ;;  %v468_v35 = vpop.permute.xlu0 %467 }
 0x10a   : > { %749 = vperm.xlu1 %1474, %v1732_v16  }
 0x10c   : > { %1277 = vmatmul.mubr.f32.gmra.mrb[14].mxu0 %v425_v45 }
 0x10e   : > { %753 = vperm.xlu1 %1474, %v1701_v12   ;;  %v464_v12 = vpop.permute.xlu1 %463 }
 0x112   : > { %1476 = vset.pattern.permute.xlu1 %v1553_v48  ;;  %v472_v26 = vpop.permute.xlu1 %471 }
 0x113   : > { %1002 = vperm.xlu1 %1476, %v1724_v15  }
 0x117   : > { %1006 = vperm.xlu1 %1476, %v1732_v16  }
 0x11b   : > { %1477 = vset.pattern.permute.xlu1 %v1552_v47  ;;  %v476_v47 = vpop.permute.xlu0 %475 }
 0x11c   : > { %761 = vperm.xlu1 %1477, %v1741_v17  }
 0x120   : > { %1479 = vset.pattern.permute.xlu1 %v1553_v48 }
 0x121   : > { %1014 = vperm.xlu1 %1479, %v1712_v14   ;;  %v484_v14 = vpop.permute.xlu0 %483 }
 0x125   : > { %1018 = vperm.xlu1 %1479, %v1741_v17  }
 0x1c3   : > { %v1257_v49 = vpop.f32.mrb[0].mxu0 }
 0x1c4   : > { %v562_v50 = vadd.f32 %v1257_v49, %v432_v8  ;;  %v556_v51 = vpop.f32.mrb[1].mxu0 }
 0x1c5   : > { %v557_v52 = vadd.f32 %v556_v51, %v428_v0  ;;  %v480_v0 = vpop.permute.xlu1 %479 }
 0x1c6   : > { %v652_v53 = vmul.f32 0.2, %v562_v50  ;;  %vm636_vm0 = vcmp.gt.f32.partialorder %v562_v50, 0.0 }
 0x1c7   : > { %v651_v54 = vmul.f32 0.2, %v557_v52  ;;  %v1260_v55 = vpop.f32.mrb[2].mxu0  ;;  %vm635_vm1 = vcmp.gt.f32.partialorder %v557_v52, 0.0 }
 0x1c8   : > { %v572_v10 = vadd.f32 %v1260_v55, %v440_v3  ;;  %v566_v24 = vpop.f32.mrb[3].mxu0  ;;  %v668_v56 = vsel %vm636_vm0, %v562_v50, %v652_v53 }
 0x1c9   : > { %v567_v57 = vadd.f32 %v566_v24, %v436_v6  ;;  %v667_v58 = vsel %vm635_vm1, %v557_v52, %v651_v54  ;;  %v488_v48 = vpop.permute.xlu1 %487 }
 0x1ca   : > { %vm638_vm2 = vcmp.gt.f32.partialorder %v572_v10, 0.0  ;;  %v654_v59 = vmul.f32 0.2, %v572_v10  ;;  %v1367_v60 = vpack.c.bf16 %v668_v56, %v667_v58 }
 0x1cb   : > { %vm637_vm3 = vcmp.gt.f32.partialorder %v567_v57, 0.0  ;;  %v653_v61 = vmul.f32 0.2, %v567_v57  ;;  %v1263_v62 = vpop.f32.mrb[4].mxu0 }
 0x1cc   : > { %v582_v63 = vadd.f32 %v1263_v62, %v448_v9  ;;  %v576_v2 = vpop.f32.mrb[5].mxu0  ;;  %1368 = vmatprep.subr.bf16.mxu1 %v1367_v60  ;;  %v670_v7 = vsel %vm638_vm2, %v572_v10, %v654_v59 }
 0x1cd   : > { %v577_v18 = vadd.f32 %v576_v2, %v444_v11  ;;  %1370 = vmatpush3.bf16.msra.mxu1 %v1367_v60  ;;  %v669_v19 = vsel %vm637_vm3, %v567_v57, %v653_v61  ;;  %v1142_v2 = vld [vmem:[%s2016_s1 + $0x90] sm:$0xff] }
 0x1ce   : > { %vm640_vm4 = vcmp.gt.f32.partialorder %v582_v63, 0.0  ;;  %v656_v21 = vmul.f32 0.2, %v582_v63  ;;  %v1371_v22 = vpack.c.bf16 %v670_v7, %v669_v19  ;;  %v1143_v7 = vld [vmem:[%s2016_s1 + $0x98] sm:$0xff]  ;;  %v1146_v19 = vld [vmem:[%s2016_s1 + $0xb0] sm:$0xff] }
 0x1cf   : > { %vm639_vm5 = vcmp.gt.f32.partialorder %v577_v18, 0.0  ;;  %v655_v25 = vmul.f32 0.2, %v577_v18  ;;  %v1266_v27 = vpop.f32.mrb[6].mxu0 }
 0x1d0   : > { %v592_v28 = vadd.f32 %v1266_v27, %v456_v5  ;;  %v586_v29 = vpop.f32.mrb[7].mxu0  ;;  %1372 = vmatprep.subr.bf16.mxu1 %v1371_v22  ;;  %v672_v30 = vsel %vm640_vm4, %v582_v63, %v656_v21  ;;  %v1141_v63 = vld [vmem:[%s2016_s1 + $0x88] sm:$0xff]  ;;  %v1148_v21 = vld [vmem:[%s2016_s1 + $0xc0] sm:$0xff]  ;;  %v1151_v27 = vld [vmem:[%s2016_s1 + $0xd8] sm:$0xff] }
 0x1d1   : > { %v587_v31 = vadd.f32 %v586_v29, %v452_v13  ;;  %1374 = vmatpush3.bf16.msra.mxu1 %v1371_v22  ;;  %v671_v15 = vsel %vm639_vm5, %v577_v18, %v655_v25  ;;  %v1145_v18 = vld [vmem:[%s2016_s1 + $0xa8] sm:$0xff]  ;;  %v1150_v25 = vld [vmem:[%s2016_s1 + $0xd0] sm:$0xff] }
 0x1d2   : > { %vm642_vm6 = vcmp.gt.f32.partialorder %v592_v28, 0.0  ;;  %v658_v23 = vmul.f32 0.2, %v592_v28  ;;  %v1375_v32 = vpack.c.bf16 %v672_v30, %v671_v15  ;;  %v1149_v22 = vld [vmem:[%s2016_s1 + $0xc8] sm:$0xff]  ;;  %v1154_v30 = vld [vmem:[%s2016_s1 + $0xf0] sm:$0xff]  ;;  %v706_v15 = vpop.permute.xlu1 %705 }
 0x1d3   : > { %vm641_vm7 = vcmp.gt.f32.partialorder %v587_v31, 0.0  ;;  %v657_v33 = vmul.f32 0.2, %v587_v31  ;;  %v1269_v34 = vpop.f32.mrb[8].mxu0  ;;  %v1153_v29 = vld [vmem:[%s2016_s1 + $0xe8] sm:$0xff] }
 0x1d4   : > { %v602_v36 = vadd.f32 %v1269_v34, %v464_v12  ;;  %v596_v37 = vpop.f32.mrb[9].mxu0  ;;  %1376 = vmatprep.subr.bf16.mxu1 %v1375_v32  ;;  %v674_v38 = vsel %vm642_vm6, %v592_v28, %v658_v23  ;;  %v1144_v12 = vld [vmem:[%s2016_s1 + $0xa0] sm:$0xff] }
 0x1d5   : > { %v597_v39 = vadd.f32 %v596_v37, %v460_v20  ;;  %1378 = vmatpush3.bf16.msra.mxu1 %v1375_v32  ;;  %v673_v16 = vsel %vm641_vm7, %v587_v31, %v657_v33  ;;  %v1147_v20 = vld [vmem:[%s2016_s1 + $0xb8] sm:$0xff]  ;;  %v1152_v28 = vld [vmem:[%s2016_s1 + $0xe0] sm:$0xff] }
 0x1d6   : > { %vm644_vm8 = vcmp.gt.f32.partialorder %v602_v36, 0.0  ;;  %v660_v40 = vmul.f32 0.2, %v602_v36  ;;  %v1379_v41 = vpack.c.bf16 %v674_v38, %v673_v16  ;;  %v1155_v31 = vld [vmem:[%s2016_s1 + $0xf8] sm:$0xff]  ;;  %v710_v23 = vpop.permute.xlu1 %709 }
 0x1d7   : > { %vm643_vm9 = vcmp.gt.f32.partialorder %v597_v39, 0.0  ;;  %v659_v42 = vmul.f32 0.2, %v597_v39  ;;  %v1272_v43 = vpop.f32.mrb[10].mxu0 }
 0x1d8   : > { %v612_v44 = vadd.f32 %v1272_v43, %v472_v26  ;;  %v606_v45 = vpop.f32.mrb[11].mxu0  ;;  %1380 = vmatprep.subr.bf16.mxu1 %v1379_v41  ;;  %v676_v46 = vsel %vm644_vm8, %v602_v36, %v660_v40 }
 0x1d9   : > { %v607_v1 = vadd.f32 %v606_v45, %v468_v35  ;;  %1382 = vmatpush3.bf16.msra.mxu1 %v1379_v41  ;;  %v675_v4 = vsel %vm643_vm9, %v597_v39, %v659_v42  ;;  %v702_v39 = vpop.permute.xlu0 %701 }
 0x1da   : > { %vm646_vm10 = vcmp.gt.f32.partialorder %v612_v44, 0.0  ;;  %v662_v6 = vmul.f32 0.2, %v612_v44  ;;  %v1383_v3 = vpack.c.bf16 %v676_v46, %v675_v4  ;;  %v959_v32 = vpop.permute.xlu1 %958 }
 0x1db   : > { %vm645_vm11 = vcmp.gt.f32.partialorder %v607_v1, 0.0  ;;  %v661_v8 = vmul.f32 0.2, %v607_v1  ;;  %v1275_v9 = vpop.f32.mrb[12].mxu0 }
 0x1dc   : > { %v622_v11 = vadd.f32 %v1275_v9, %v480_v0  ;;  %v616_v49 = vpop.f32.mrb[13].mxu0  ;;  %1384 = vmatprep.subr.bf16.mxu1 %v1383_v3  ;;  %v678_v50 = vsel %vm646_vm10, %v612_v44, %v662_v6 }
 0x1dd   : > { %v617_v51 = vadd.f32 %v616_v49, %v476_v47  ;;  %1386 = vmatpush3.bf16.msra.mxu1 %v1383_v3  ;;  %v677_v52 = vsel %vm645_vm11, %v607_v1, %v661_v8  ;;  %v714_v40 = vpop.permute.xlu0 %713 }
 0x1de   : > { %vm648_vm12 = vcmp.gt.f32.partialorder %v622_v11, 0.0  ;;  %v664_v53 = vmul.f32 0.2, %v622_v11  ;;  %v1387_v5 = vpack.c.bf16 %v678_v50, %v677_v52  ;;  %v718_v26 = vpop.permute.xlu1 %717 }
 0x1df   : > { %vm647_vm13 = vcmp.gt.f32.partialorder %v617_v51, 0.0  ;;  %v663_v54 = vmul.f32 0.2, %v617_v51  ;;  %v1278_v55 = vpop.f32.mrb[14].mxu0 }
 0x1e0   : > { %v632_v13 = vadd.f32 %v1278_v55, %v488_v48  ;;  %v626_v10 = vpop.f32.mrb[15].mxu0  ;;  %1388 = vmatprep.subr.bf16.mxu1 %v1387_v5  ;;  %v680_v24 = vsel %vm648_vm12, %v622_v11, %v664_v53 }
 0x1e1   : > { %v627_v56 = vadd.f32 %v626_v10, %v484_v14  ;;  %1390 = vmatpush3.bf16.msra.mxu1 %v1387_v5  ;;  %v679_v57 = vsel %vm647_vm13, %v617_v51, %v663_v54  ;;  %v722_v42 = vpop.permute.xlu0 %721 }
 0x1e2   : > { %vm650_vm14 = vcmp.gt.f32.partialorder %v632_v13, 0.0  ;;  %v666_v58 = vmul.f32 0.2, %v632_v13  ;;  %v1391_v59 = vpack.c.bf16 %v680_v24, %v679_v57  ;;  %v967_v33 = vpop.permute.xlu1 %966 }
 0x1e3   : > { %vm649_vm15 = vcmp.gt.f32.partialorder %v627_v56, 0.0  ;;  %v665_v60 = vmul.f32 0.2, %v627_v56 }
 0x1e4   : > { %1392 = vmatprep.subr.bf16.mxu1 %v1391_v59  ;;  %v682_v61 = vsel %vm650_vm14, %v632_v13, %v666_v58 }
 0x1e5   : > { %1394 = vmatpush3.bf16.msra.mxu1 %v1391_v59  ;;  %v681_v17 = vsel %vm649_vm15, %v627_v56, %v665_v60  ;;  %v963_v44 = vpop.permute.xlu0 %962 }
 0x1e6   : > { %v1395_v62 = vpack.c.bf16 %v682_v61, %v681_v17  ;;  %v971_v34 = vpop.permute.xlu1 %970 }
 0x1e8   : > { %1396 = vmatprep.subr.bf16.mxu1 %v1395_v62 }
 0x1e9   : > { %1398 = vmatpush3.bf16.msra.mxu1 %v1395_v62  ;;  %v975_v46 = vpop.permute.xlu0 %974 }
 0x1ea   : > { %v726_v35 = vpop.permute.xlu1 %725 }
 0x1ec   : > { %1312 = vmatmul.mubr.f32.vlgmr.msra.gmra.mrb[0].mxu1 %v1141_v63 }
 0x1ed   : > { %1314 = vmatprep.mubr.f32.mxu1 %v1142_v2  ;;  %v987_v8 = vpop.permute.xlu0 %986 }
 0x1ee   : > { %v730_v36 = vpop.permute.xlu1 %729 }
 0x1f0   : > { %1315 = vmatmul.mubr.f32.gmra.mrb[2].mxu1 %v1143_v7 }
 0x1f1   : > { %1317 = vmatprep.mubr.f32.mxu1 %v1144_v12  ;;  %v1954_v57 = vpop.permute.xlu0 %998 }
 0x1f2   : > { %v1938_v37 = vpop.permute.xlu1 %978 }
 0x1f4   : > { %1318 = vmatmul.mubr.f32.gmra.mrb[4].mxu1 %v1145_v18 }
 0x1f5   : > { %1320 = vmatprep.mubr.f32.mxu1 %v1146_v19 }
 0x1f6   : > { %v1940_v38 = vpop.permute.xlu1 %982 }
 0x1f8   : > { %1321 = vmatmul.mubr.f32.gmra.mrb[6].mxu1 %v1147_v20 }
 0x1f9   : > { %1323 = vmatprep.mubr.f32.mxu1 %v1148_v21  ;;  %v734_v21 = vpop.permute.xlu0 %733 }
 0x1fa   : > { %v1942_v16 = vpop.permute.xlu1 %737 }
 0x1fc   : > { %1324 = vmatmul.mubr.f32.gmra.mrb[8].mxu1 %v1149_v22 }
 0x1fd   : > { %1326 = vmatprep.mubr.f32.mxu1 %v1150_v25 }
 0x1fe   : > { %v1944_v41 = vpop.permute.xlu1 %741 }
 0x200   : > { %1327 = vmatmul.mubr.f32.gmra.mrb[10].mxu1 %v1151_v27 }
 0x201   : > { %1329 = vmatprep.mubr.f32.mxu1 %v1152_v28 }
 0x202   : > { %v1946_v43 = vpop.permute.xlu1 %990 }
 0x204   : > { %1330 = vmatmul.mubr.f32.gmra.mrb[12].mxu1 %v1153_v29 }
 0x205   : > { %1332 = vmatprep.mubr.f32.mxu1 %v1154_v30 }
 0x206   : > { %v1948_v45 = vpop.permute.xlu1 %994 }
 0x208   : > { %1333 = vmatmul.mubr.f32.gmra.mrb[14].mxu1 %v1155_v31 }
 0x20a   : > { %v1950_v1 = vpop.permute.xlu1 %749 }
 0x20e   : > { %v1952_v48 = vpop.permute.xlu1 %753 }
 0x212   : > { %v1956_v2 = vpop.permute.xlu1 %1002 }
 0x2bf   : > { %v1313_v0 = vpop.f32.mrb[0].mxu1 }
 0x2c0   : > { %v836_v4 = vadd.f32 %v1313_v0, %v706_v15  ;;  %v830_v47 = vpop.f32.mrb[1].mxu1 }
 0x2c1   : > { %v831_v6 = vadd.f32 %v830_v47, %v702_v39  ;;  %v1007_v39 = vpop.permute.xlu1 %1006 }
 0x2c2   : > { %vm910_vm0 = vcmp.gt.f32.partialorder %v836_v4, 0.0  ;;  %v926_v3 = vmul.f32 0.2, %v836_v4 }
 0x2c3   : > { %vm909_vm1 = vcmp.gt.f32.partialorder %v831_v6, 0.0  ;;  %v925_v9 = vmul.f32 0.2, %v831_v6  ;;  %v1316_v11 = vpop.f32.mrb[2].mxu1 }
 0x2c4   : > { %v942_v49 = vsel %vm910_vm0, %v836_v4, %v926_v3  ;;  %v846_v50 = vadd.f32 %v1316_v11, %v714_v40  ;;  %v840_v51 = vpop.f32.mrb[3].mxu1 }
 0x2c5   : > { %v1022_v52 = vmul.f32 %v963_v44, %v942_v49  ;;  %v941_v53 = vsel %vm909_vm1, %v831_v6, %v925_v9  ;;  %v841_v5 = vadd.f32 %v840_v51, %v710_v23  ;;  %v746_v44 = vpop.permute.xlu0 %745  ;;  %v762_v11 = vpop.permute.xlu1 %761 }
 0x2c6   : > { %v1021_v54 = vmul.f32 %v959_v32, %v941_v53  ;;  %vm912_vm2 = vcmp.gt.f32.partialorder %v846_v50, 0.0  ;;  %v928_v55 = vmul.f32 0.2, %v846_v50 }
 0x2c7   : > { %vm911_vm3 = vcmp.gt.f32.partialorder %v841_v5, 0.0  ;;  %v927_v14 = vmul.f32 0.2, %v841_v5  ;;  %v1319_v13 = vpop.f32.mrb[4].mxu1 }
 0x2c8   : > { %v1037_v10 = vadd.f32 %v1022_v52, %v1021_v54  ;;  %v856_v24 = vadd.f32 %v1319_v13, %v722_v42  ;;  %v850_v56 = vpop.f32.mrb[5].mxu1  ;;  %v944_v58 = vsel %vm912_vm2, %v846_v50, %v928_v55 }
 0x2c9   : > { %v943_v59 = vsel %vm911_vm3, %v841_v5, %v927_v14  ;;  %v851_v60 = vadd.f32 %v850_v56, %v718_v26  ;;  %v1024_v7 = vmul.f32 %v971_v34, %v944_v58  ;;  %v758_v55 = vpop.permute.xlu0 %757  ;;  %v1015_v58 = vpop.permute.xlu1 %1014 }
 0x2ca   : > { %v1023_v61 = vmul.f32 %v967_v33, %v943_v59  ;;  %vm914_vm4 = vcmp.gt.f32.partialorder %v856_v24, 0.0  ;;  %v930_v17 = vmul.f32 0.2, %v856_v24 }
 0x2cb   : > { %vm913_vm5 = vcmp.gt.f32.partialorder %v851_v60, 0.0  ;;  %v929_v62 = vmul.f32 0.2, %v851_v60  ;;  %v1322_v63 = vpop.f32.mrb[6].mxu1 }
 0x2cc   : > { %v1038_v12 = vadd.f32 %v1037_v10, %v1023_v61  ;;  %v866_v18 = vadd.f32 %v1322_v63, %v730_v36  ;;  %v860_v19 = vpop.f32.mrb[7].mxu1  ;;  %v946_v20 = vsel %vm914_vm4, %v856_v24, %v930_v17 }
 0x2cd   : > { %v945_v22 = vsel %vm913_vm5, %v851_v60, %v929_v62  ;;  %v861_v25 = vadd.f32 %v860_v19, %v726_v35  ;;  %v1026_v15 = vmul.f32 %v1938_v37, %v946_v20  ;;  %v1011_v62 = vpop.permute.xlu0 %1010 }
 0x2ce   : > { %v1025_v27 = vmul.f32 %v975_v46, %v945_v22  ;;  %v1039_v28 = vadd.f32 %v1038_v12, %v1024_v7  ;;  %vm916_vm6 = vcmp.gt.f32.partialorder %v866_v18, 0.0  ;;  %v932_v29 = vmul.f32 0.2, %v866_v18  ;;  %v1019_v22 = vpop.permute.xlu1 %1018 }
 0x2cf   : > { %vm915_vm7 = vcmp.gt.f32.partialorder %v861_v25, 0.0  ;;  %v931_v30 = vmul.f32 0.2, %v861_v25  ;;  %v1325_v31 = vpop.f32.mrb[8].mxu1 }
 0x2d0   : > { %v1040_v23 = vadd.f32 %v1039_v28, %v1025_v27  ;;  %v876_v32 = vadd.f32 %v1325_v31, %v1942_v16  ;;  %v870_v26 = vpop.f32.mrb[9].mxu1  ;;  %v948_v33 = vsel %vm916_vm6, %v866_v18, %v932_v29 }
 0x2d1   : > { %v947_v34 = vsel %vm915_vm7, %v861_v25, %v931_v30  ;;  %v871_v36 = vadd.f32 %v870_v26, %v734_v21  ;;  %v1028_v4 = vmul.f32 %v987_v8, %v948_v33  ;;  %v1061_v33 = vpop.permute.xlu0 %1060 }
 0x2d2   : > { %v1027_v40 = vmul.f32 %v1940_v38, %v947_v34  ;;  %v1041_v35 = vadd.f32 %v1040_v23, %v1026_v15  ;;  %vm918_vm8 = vcmp.gt.f32.partialorder %v876_v32, 0.0  ;;  %v934_v42 = vmul.f32 0.2, %v876_v32 }
 0x2d3   : > { %vm917_vm9 = vcmp.gt.f32.partialorder %v871_v36, 0.0  ;;  %v933_v46 = vmul.f32 0.2, %v871_v36  ;;  %v1328_v0 = vpop.f32.mrb[10].mxu1 }
 0x2d4   : > { %v1042_v47 = vadd.f32 %v1041_v35, %v1027_v40  ;;  %v886_v37 = vadd.f32 %v1328_v0, %v746_v44  ;;  %v880_v6 = vpop.f32.mrb[11].mxu1  ;;  %v950_v3 = vsel %vm918_vm8, %v876_v32, %v934_v42 }
 0x2d5   : > { %v949_v16 = vsel %vm917_vm9, %v871_v36, %v933_v46  ;;  %v881_v9 = vadd.f32 %v880_v6, %v1944_v41  ;;  %v1030_v53 = vmul.f32 %v1948_v45, %v950_v3 }
 0x2d6   : > { %v1029_v49 = vmul.f32 %v1946_v43, %v949_v16  ;;  %v1043_v50 = vadd.f32 %v1042_v47, %v1028_v4  ;;  %vm920_vm10 = vcmp.gt.f32.partialorder %v886_v37, 0.0  ;;  %v936_v38 = vmul.f32 0.2, %v886_v37 }
 0x2d7   : > { %vm919_vm11 = vcmp.gt.f32.partialorder %v881_v9, 0.0  ;;  %v935_v51 = vmul.f32 0.2, %v881_v9  ;;  %v1331_v52 = vpop.f32.mrb[12].mxu1 }
 0x2d8   : > { %v1044_v5 = vadd.f32 %v1043_v50, %v1029_v49  ;;  %v896_v8 = vadd.f32 %v1331_v52, %v1952_v48  ;;  %v890_v54 = vpop.f32.mrb[13].mxu1  ;;  %v952_v14 = vsel %vm920_vm10, %v886_v37, %v936_v38 }
 0x2d9   : > { %v951_v13 = vsel %vm919_vm11, %v881_v9, %v935_v51  ;;  %v891_v41 = vadd.f32 %v890_v54, %v1950_v1  ;;  %v1032_v45 = vmul.f32 %v1956_v2, %v952_v14 }
 0x2da   : > { %v1031_v10 = vmul.f32 %v1954_v57, %v951_v13  ;;  %v1045_v43 = vadd.f32 %v1044_v5, %v1030_v53  ;;  %v938_v24 = vmul.f32 0.2, %v896_v8  ;;  %vm922_vm12 = vcmp.gt.f32.partialorder %v896_v8, 0.0 }
 0x2db   : > { %vm921_vm13 = vcmp.gt.f32.partialorder %v891_v41, 0.0  ;;  %v937_v56 = vmul.f32 0.2, %v891_v41  ;;  %v1334_v59 = vpop.f32.mrb[14].mxu1 }
 0x2dc   : > { %v1046_v60 = vadd.f32 %v1045_v43, %v1031_v10  ;;  %v906_v61 = vadd.f32 %v1334_v59, %v762_v11  ;;  %v900_v48 = vpop.f32.mrb[15].mxu1  ;;  %v954_v63 = vsel %vm922_vm12, %v896_v8, %v938_v24 }
 0x2dd   : > { %v953_v17 = vsel %vm921_vm13, %v891_v41, %v937_v56  ;;  %v901_v7 = vadd.f32 %v900_v48, %v758_v55  ;;  %v1034_v19 = vmul.f32 %v1011_v62, %v954_v63 }
 0x2de   : > { %v1033_v12 = vmul.f32 %v1007_v39, %v953_v17  ;;  %v940_v1 = vmul.f32 0.2, %v906_v61  ;;  %v1047_v18 = vadd.f32 %v1046_v60, %v1032_v45  ;;  %vm924_vm14 = vcmp.gt.f32.partialorder %v906_v61, 0.0 }
 0x2df   : > { %vm923_vm15 = vcmp.gt.f32.partialorder %v901_v7, 0.0  ;;  %v939_v57 = vmul.f32 0.2, %v901_v7 }
 0x2e0   : > { %v1048_v20 = vadd.f32 %v1047_v18, %v1033_v12  ;;  %v956_v25 = vsel %vm924_vm14, %v906_v61, %v940_v1 }
 0x2e1   : > { %v955_v21 = vsel %vm923_vm15, %v901_v7, %v939_v57  ;;  %v1036_v28 = vmul.f32 %v1019_v22, %v956_v25 }
 0x2e2   : > { %v1049_v27 = vadd.f32 %v1048_v20, %v1034_v19  ;;  %v1035_v2 = vmul.f32 %v1015_v58, %v955_v21 }
 0x2e4   : > { %v1050_v29 = vadd.f32 %v1049_v27, %v1035_v2 }
 0x2e6   : > { %v1051_v30 = vadd.f32 %v1050_v29, %v1036_v28 }
 0x2e8   : > { %v1052_v31 = vrot.slane %v1051_v30, 4 }
 0x2ea   : > { %v1053_v15 = vadd.f32 %v1052_v31, %v1051_v30 }
 0x2ec   : > { %v1054_v23 = vrot.slane %v1053_v15, 2 }
 0x2ee   : > { %v1055_v32 = vadd.f32 %v1054_v23, %v1053_v15 }
 0x2f0   : > { %v1056_v26 = vrot.slane %v1055_v32, 1 }
 0x2f2   : > { %v1057_v34 = vadd.f32 %v1056_v26, %v1055_v32 }
 0x2f4   : > { %v1063_v36 = vadd.f32 %v1061_v33, %v1057_v34 }
 0x2f6   : > { %v1064_v39 = vsub.f32 0.0, %v1063_v36 }
 0x2f8   : > { %v1065_v40 = vmul.f32 1.442695, %v1064_v39 }
 0x2fa   : > { %1481 = vpow2.f32 %v1065_v40 }
 0x304   : > { %v1482_v35 = vpop.eup %1481 }
 0x305   : > { %v1067_v42 = vadd.f32 1.0, %v1482_v35 }
 0x307   : > { %1483 = vrcp.f32 %v1067_v42 }
 0x311   : > { %v1484_v44 = vpop.eup %1483 }
 0x312   : > { %1069 = vst [vmem:[%s158_s11] sm:$0x1] %v1484_v44 }
 0x313   : > { %1498 = shalt.err (!%p1495_p3)
}
 0x314   : > { %s1499_s29 = scalar_lea.hbm %s1973_s24, 16  ;;  %s1503_s5 = scalar_lea.hbm %s2018_s3, 32 }
 0x315   : > { %p1500_p4 = scmp.ne.s32.totalorder %s1973_s24, %s1499_s29  ;;  %p1504_p9 = scmp.lt.u32.totalorder %s1973_s24, %s2018_s3 }
 0x316   : > { %p1505_p10 = scmp.lt.u32.totalorder %s1503_s5, %s1499_s29  ;;  %p1507_p12 = scmp.lt.u32.totalorder %s1499_s29, %s1973_s24 }
 0x317   : > { %p1501_p7 = pnand %p1500_p4, %p1614_p5 }
 0x318   : > { %p1506_p11 = por %p1505_p10, %p1504_p9 }
 0x319   : > { %p1502_p8 = pneg %p1501_p7 }
 0x31a   : > { %p1508_p13 = por %p1507_p12, %p1506_p11 }
 0x31c   : > { %p1509_p0 = pnand %p1508_p13, %p1502_p8 }
 0x31e   : > { %1512 = shalt.err (!%p1509_p0)
}
 0x31f   : > { %1399 = dma.vmem_to_hbm [thread:$0]  (%p1614_p5), %s1975_s17, 16, %s1973_s24, %s1071_s25  }
 0x320 PF: > { %p1405_p1 = scmp.ge.s32.totalorder %s1547_s15, 2  ;;  %s1095_s8 = sand.u32 1, %s1535_s12  }
 0x321   : > { %s1096_s9 = scalar_lea.sflag [#allocation3], %s1095_s8 }
 0x322   : > { %p1402_p2 = pnand %p1405_p1, %p1618_p6 }
 0x324   : > { %1530 = dma.done.wait (!%p1402_p2), %s1096_s9, 16  }
 0x325   : > { %1532 = vsyncadd (!%p1402_p2), %s1096_s9, 4294967280  ;;  %p13_p3 = scmp.ge.s32.totalorder %s1601_s18, 4   ;;  %s2021_s12 = smov %s1539_s13 }
 0x326   : > { %s2022_s13 = smov %s1543_s14  ;;  %s2023_s14 = smov %s1612_s21 }
 0x327   : > { %s2024_s15 = smov %s1601_s18  ;;  %15 = sbr.rel (!%p13_p3) target bundleno = 3 (0x3), region = 68 }
 0x32e   :  { %1100 = vsyncpa [#allocation3], 1 }
 0x32f   :  { %1102 = vsyncpa [#allocation3 + $0x1], 1 }

</bundles_post_ra>
